<compile_context>
chip_gen: v6e
topology: v6e:2x2x1
jax: 0.10.0
libtpu: 0.0.40
codegen_flags: <defaults>
</compile_context>

<pallas_src>
import functools

import jax
import jax.numpy as jnp
from jax.experimental import pallas as pl
from jax.experimental.pallas import tpu as pltpu

LANE = 128
SUBLANE = 8
VMEM_BUDGET = 48 * 1024 * 1024  # leave headroom under v7x's 64 MiB


def _round_up(n: int, m: int) -> int:
    return ((n + m - 1) // m) * m


def _pad2(a, shape):
    """Zero-pad a 2-D array up to `shape` (no-op copy skipped if aligned)."""
    if tuple(a.shape) == tuple(shape):
        return a
    return jnp.zeros(shape, a.dtype).at[: a.shape[0], : a.shape[1]].set(a)


def mlp_kernel(x_ref, w1_ref, b1_ref, w2_ref, b2_ref, w3_ref, b3_ref, o_ref,
               *, hidden_layers: int):
    """One batch tile through the whole MLP; every matmul hits the MXU."""
    x = x_ref[...]

    # l1 + relu
    h = jnp.dot(x, w1_ref[...], preferred_element_type=jnp.float32) + b1_ref[...]
    h = jnp.maximum(h, 0.0)

    # Hoist the shared hidden-layer weights out of the unrolled loop: Ref
    # reads are stateful and are not CSE'd across iterations.
    w2 = w2_ref[...]
    b2 = b2_ref[...]
    for _ in range(hidden_layers):  # static trip count -> unrolled
        h = jnp.dot(h, w2, preferred_element_type=jnp.float32) + b2
        h = jnp.maximum(h, 0.0)

    # l3 (no activation)
    out = jnp.dot(h, w3_ref[...], preferred_element_type=jnp.float32) + b3_ref[...]
    o_ref[...] = out.astype(o_ref.dtype)


def _pick_tm(batch: int, in_p: int, hid_p: int, out_p: int) -> int:
    """Largest batch tile (multiple of 8, <= 512) that fits the VMEM budget."""
    bytes_per = 4  # f32
    weight_bytes = (in_p * hid_p + hid_p * hid_p + hid_p * out_p
                    + 3 * hid_p + out_p) * bytes_per
    tm = min(512, _round_up(batch, SUBLANE))
    while tm > SUBLANE:
        # 2x double-buffered x and out tiles + one resident activation tile.
        act_bytes = tm * (2 * in_p + 2 * out_p + hid_p) * bytes_per
        if weight_bytes + act_bytes <= VMEM_BUDGET:
            break
        tm //= 2
    return max(tm, SUBLANE)


def mlp_forward(x, params, hidden_layers: int, *, tm: int | None = None):
    w1, b1, w2, b2, w3, b3 = params
    batch, in_c = x.shape
    hid = w1.shape[1]
    out_c = w3.shape[1]

    # Lane-pad every feature dim to 128; sublane-pad / tile the batch.
    in_p = _round_up(in_c, LANE)
    hid_p = _round_up(hid, LANE)
    out_p = _round_up(out_c, LANE)
    if tm is None:
        tm = _pick_tm(batch, in_p, hid_p, out_p)
    b_p = _round_up(batch, tm)

    xp = _pad2(x, (b_p, in_p))
    w1p, b1p = _pad2(w1, (in_p, hid_p)), _pad2(b1, (1, hid_p))
    w2p, b2p = _pad2(w2, (hid_p, hid_p)), _pad2(b2, (1, hid_p))
    w3p, b3p = _pad2(w3, (hid_p, out_p)), _pad2(b3, (1, out_p))

    def const_spec(shape):
        # Weights/biases: same block every grid step -> stay VMEM-resident.
        return pl.BlockSpec(shape, lambda i: (0, 0))

    flops = 2 * b_p * (in_p * hid_p + hidden_layers * hid_p * hid_p
                       + hid_p * out_p)
    bytes_accessed = 4 * (b_p * in_p + b_p * out_p
                          + in_p * hid_p + hid_p * hid_p + hid_p * out_p
                          + 3 * hid_p + out_p)

    kernel = functools.partial(mlp_kernel, hidden_layers=hidden_layers)
    out_padded = pl.pallas_call(
        kernel,
        out_shape=jax.ShapeDtypeStruct((b_p, out_p), x.dtype),
        grid_spec=pltpu.PrefetchScalarGridSpec(
            num_scalar_prefetch=0,
            grid=(b_p // tm,),
            in_specs=[
                pl.BlockSpec((tm, in_p), lambda i: (i, 0)),
                const_spec(w1p.shape), const_spec(b1p.shape),
                const_spec(w2p.shape), const_spec(b2p.shape),
                const_spec(w3p.shape), const_spec(b3p.shape),
            ],
            out_specs=pl.BlockSpec((tm, out_p), lambda i: (i, 0)),
        ),
        compiler_params=pltpu.CompilerParams(
            dimension_semantics=("parallel",),   # shards across v7x's 2 TCs
            vmem_limit_bytes=64 * 1024 * 1024,
        ),
        cost_estimate=pl.CostEstimate(
            flops=flops, transcendentals=0, bytes_accessed=bytes_accessed),
    )(xp, w1p, b1p, w2p, b2p, w3p, b3p)

    # Strip the lane/batch padding.
    return out_padded[:batch, :out_c]


def init_params(key, in_channels: int, out_channels: int):
    """Deterministic init matching PyTorch Linear shapes.

    PyTorch stores weight as (out, in); we store the transpose (in, out).
    Init: uniform(-1/sqrt(fan_in), 1/sqrt(fan_in)) like torch.nn.Linear.
    """
    hidden = in_channels * 2
    keys = jax.random.split(key, 6)

    def lin(kw, kb, fan_in, fan_out):
        bound = 1.0 / jnp.sqrt(fan_in)
        w = jax.random.uniform(kw, (fan_in, fan_out), jnp.float32, -bound, bound)
        b = jax.random.uniform(kb, (1, fan_out), jnp.float32, -bound, bound)
        return w, b

    w1, b1 = lin(keys[0], keys[1], in_channels, hidden)
    w2, b2 = lin(keys[2], keys[3], hidden, hidden)
    w3, b3 = lin(keys[4], keys[5], hidden, out_channels)
    return (w1, b1, w2, b2, w3, b3)


def mlp_ref(x, params, hidden_layers: int):
    """Pure-JAX reference of the PyTorch forward pass."""
    w1, b1, w2, b2, w3, b3 = params
    h = jnp.maximum(x @ w1 + b1, 0.0)
    for _ in range(hidden_layers):
        h = jnp.maximum(h @ w2 + b2, 0.0)
    return h @ w3 + b3


if __name__ == "__main__":
    in_channels = 32
    out_channels = 16
    hidden_layers = 3
    batch = 8

    key = jax.random.PRNGKey(0)
    kx, kp = jax.random.split(key)
    x = jax.random.normal(kx, (batch, in_channels), jnp.float32)
    params = init_params(kp, in_channels, out_channels)

    out = mlp_forward(x, params, hidden_layers)
    out = jax.block_until_ready(out)

    ref = mlp_ref(x, params, hidden_layers)
    assert out.shape == (batch, out_channels)
    assert jnp.allclose(out, ref, atol=1e-5, rtol=1e-5)

    print("KERNEL_OK")
</pallas_src>

<mosaic_0001>
module attributes {stable_mosaic.version = 11 : i64} {
  func.func @mlp_kernel(%arg0: i32, %arg1: memref<8x128xf32, #tpu.memory_space<vmem>>, %arg2: memref<128x128xf32, #tpu.memory_space<vmem>>, %arg3: memref<1x128xf32, #tpu.memory_space<vmem>>, %arg4: memref<128x128xf32, #tpu.memory_space<vmem>>, %arg5: memref<1x128xf32, #tpu.memory_space<vmem>>, %arg6: memref<128x128xf32, #tpu.memory_space<vmem>>, %arg7: memref<1x128xf32, #tpu.memory_space<vmem>>, %arg8: memref<8x128xf32, #tpu.memory_space<vmem>>) attributes {dimension_semantics = [#tpu.dimension_semantics<parallel>], iteration_bounds = array<i64: 1>, scalar_prefetch = 0 : i64, scratch_operands = 0 : i64, tpu.core_type = #tpu.core_type<tc>, window_params = [{transform_indices = @transform_0, window_bounds = array<i64: 8, 128>}, {pipeline_mode = #tpu.pipeline_mode<synchronous>, transform_indices = @transform_1, window_bounds = array<i64: 128, 128>}, {pipeline_mode = #tpu.pipeline_mode<synchronous>, transform_indices = @transform_2, window_bounds = array<i64: 1, 128>}, {pipeline_mode = #tpu.pipeline_mode<synchronous>, transform_indices = @transform_3, window_bounds = array<i64: 128, 128>}, {pipeline_mode = #tpu.pipeline_mode<synchronous>, transform_indices = @transform_4, window_bounds = array<i64: 1, 128>}, {pipeline_mode = #tpu.pipeline_mode<synchronous>, transform_indices = @transform_5, window_bounds = array<i64: 128, 128>}, {pipeline_mode = #tpu.pipeline_mode<synchronous>, transform_indices = @transform_6, window_bounds = array<i64: 1, 128>}, {transform_indices = @transform_7, window_bounds = array<i64: 8, 128>}]} {
    %c0 = arith.constant 0 : index
    %c0_0 = arith.constant 0 : index
    %0 = vector.load %arg1[%c0, %c0_0] : memref<8x128xf32, #tpu.memory_space<vmem>>, vector<8x128xf32>
    %c0_1 = arith.constant 0 : index
    %c0_2 = arith.constant 0 : index
    %1 = vector.load %arg2[%c0_1, %c0_2] : memref<128x128xf32, #tpu.memory_space<vmem>>, vector<128x128xf32>
    %cst = arith.constant dense<0.000000e+00> : vector<8x128xf32>
    %2 = tpu.matmul %0, %1, %cst {dimension_numbers = #tpu.dot_dimension_numbers<[1], [0], [0], [1], [0, 0, 1, 1], [], []>} : vector<8x128xf32>, vector<128x128xf32>, vector<8x128xf32> -> vector<8x128xf32>
    %c0_3 = arith.constant 0 : index
    %c0_4 = arith.constant 0 : index
    %3 = vector.load %arg3[%c0_3, %c0_4] : memref<1x128xf32, #tpu.memory_space<vmem>>, vector<1x128xf32>
    %4 = vector.broadcast %3 : vector<1x128xf32> to vector<8x128xf32>
    %5 = arith.addf %2, %4 : vector<8x128xf32>
    %cst_5 = arith.constant 0.000000e+00 : f32
    %6 = vector.broadcast %cst_5 : f32 to vector<8x128xf32>
    %7 = arith.maximumf %5, %6 : vector<8x128xf32>
    %c0_6 = arith.constant 0 : index
    %c0_7 = arith.constant 0 : index
    %8 = vector.load %arg4[%c0_6, %c0_7] : memref<128x128xf32, #tpu.memory_space<vmem>>, vector<128x128xf32>
    %c0_8 = arith.constant 0 : index
    %c0_9 = arith.constant 0 : index
    %9 = vector.load %arg5[%c0_8, %c0_9] : memref<1x128xf32, #tpu.memory_space<vmem>>, vector<1x128xf32>
    %cst_10 = arith.constant dense<0.000000e+00> : vector<8x128xf32>
    %10 = tpu.matmul %7, %8, %cst_10 {dimension_numbers = #tpu.dot_dimension_numbers<[1], [0], [0], [1], [0, 0, 1, 1], [], []>} : vector<8x128xf32>, vector<128x128xf32>, vector<8x128xf32> -> vector<8x128xf32>
    %11 = vector.broadcast %9 : vector<1x128xf32> to vector<8x128xf32>
    %12 = arith.addf %10, %11 : vector<8x128xf32>
    %cst_11 = arith.constant 0.000000e+00 : f32
    %13 = vector.broadcast %cst_11 : f32 to vector<8x128xf32>
    %14 = arith.maximumf %12, %13 : vector<8x128xf32>
    %cst_12 = arith.constant dense<0.000000e+00> : vector<8x128xf32>
    %15 = tpu.matmul %14, %8, %cst_12 {dimension_numbers = #tpu.dot_dimension_numbers<[1], [0], [0], [1], [0, 0, 1, 1], [], []>} : vector<8x128xf32>, vector<128x128xf32>, vector<8x128xf32> -> vector<8x128xf32>
    %16 = vector.broadcast %9 : vector<1x128xf32> to vector<8x128xf32>
    %17 = arith.addf %15, %16 : vector<8x128xf32>
    %cst_13 = arith.constant 0.000000e+00 : f32
    %18 = vector.broadcast %cst_13 : f32 to vector<8x128xf32>
    %19 = arith.maximumf %17, %18 : vector<8x128xf32>
    %cst_14 = arith.constant dense<0.000000e+00> : vector<8x128xf32>
    %20 = tpu.matmul %19, %8, %cst_14 {dimension_numbers = #tpu.dot_dimension_numbers<[1], [0], [0], [1], [0, 0, 1, 1], [], []>} : vector<8x128xf32>, vector<128x128xf32>, vector<8x128xf32> -> vector<8x128xf32>
    %21 = vector.broadcast %9 : vector<1x128xf32> to vector<8x128xf32>
    %22 = arith.addf %20, %21 : vector<8x128xf32>
    %cst_15 = arith.constant 0.000000e+00 : f32
    %23 = vector.broadcast %cst_15 : f32 to vector<8x128xf32>
    %24 = arith.maximumf %22, %23 : vector<8x128xf32>
    %c0_16 = arith.constant 0 : index
    %c0_17 = arith.constant 0 : index
    %25 = vector.load %arg6[%c0_16, %c0_17] : memref<128x128xf32, #tpu.memory_space<vmem>>, vector<128x128xf32>
    %cst_18 = arith.constant dense<0.000000e+00> : vector<8x128xf32>
    %26 = tpu.matmul %24, %25, %cst_18 {dimension_numbers = #tpu.dot_dimension_numbers<[1], [0], [0], [1], [0, 0, 1, 1], [], []>} : vector<8x128xf32>, vector<128x128xf32>, vector<8x128xf32> -> vector<8x128xf32>
    %c0_19 = arith.constant 0 : index
    %c0_20 = arith.constant 0 : index
    %27 = vector.load %arg7[%c0_19, %c0_20] : memref<1x128xf32, #tpu.memory_space<vmem>>, vector<1x128xf32>
    %28 = vector.broadcast %27 : vector<1x128xf32> to vector<8x128xf32>
    %29 = arith.addf %26, %28 : vector<8x128xf32>
    %c0_21 = arith.constant 0 : index
    %c0_22 = arith.constant 0 : index
    %30 = vector.load %arg8[%c0_21, %c0_22] : memref<8x128xf32, #tpu.memory_space<vmem>>, vector<8x128xf32>
    tpu.vector_store %arg8[%c0_21, %c0_22], %29 {strides = array<i32>} : memref<8x128xf32, #tpu.memory_space<vmem>>, vector<8x128xf32>,
    return
  }
  func.func @transform_0(%arg0: i32) -> (i32, i32) {
    %c0_i32 = arith.constant 0 : i32
    %c0_i32_0 = arith.constant 0 : i32
    return %arg0, %c0_i32 : i32, i32
  }
  func.func @transform_1(%arg0: i32) -> (i32, i32) {
    %c0_i32 = arith.constant 0 : i32
    %c0_i32_0 = arith.constant 0 : i32
    %c0_i32_1 = arith.constant 0 : i32
    return %c0_i32, %c0_i32_0 : i32, i32
  }
  func.func @transform_2(%arg0: i32) -> (i32, i32) {
    %c0_i32 = arith.constant 0 : i32
    %c0_i32_0 = arith.constant 0 : i32
    %c0_i32_1 = arith.constant 0 : i32
    return %c0_i32, %c0_i32_0 : i32, i32
  }
  func.func @transform_3(%arg0: i32) -> (i32, i32) {
    %c0_i32 = arith.constant 0 : i32
    %c0_i32_0 = arith.constant 0 : i32
    %c0_i32_1 = arith.constant 0 : i32
    return %c0_i32, %c0_i32_0 : i32, i32
  }
  func.func @transform_4(%arg0: i32) -> (i32, i32) {
    %c0_i32 = arith.constant 0 : i32
    %c0_i32_0 = arith.constant 0 : i32
    %c0_i32_1 = arith.constant 0 : i32
    return %c0_i32, %c0_i32_0 : i32, i32
  }
  func.func @transform_5(%arg0: i32) -> (i32, i32) {
    %c0_i32 = arith.constant 0 : i32
    %c0_i32_0 = arith.constant 0 : i32
    %c0_i32_1 = arith.constant 0 : i32
    return %c0_i32, %c0_i32_0 : i32, i32
  }
  func.func @transform_6(%arg0: i32) -> (i32, i32) {
    %c0_i32 = arith.constant 0 : i32
    %c0_i32_0 = arith.constant 0 : i32
    %c0_i32_1 = arith.constant 0 : i32
    return %c0_i32, %c0_i32_0 : i32, i32
  }
  func.func @transform_7(%arg0: i32) -> (i32, i32) {
    %c0_i32 = arith.constant 0 : i32
    %c0_i32_0 = arith.constant 0 : i32
    return %arg0, %c0_i32 : i32, i32
  }
}

</mosaic_0001>

<bundles_post_ra>
// kernel: tpu_custom_call.1
= control target key start
LH: loop header
LB: loop body
LE: loop exit
PB: predicated region body
PF: predicated region fallthrough
CT: control target
= control target key end

     0   :  { %12 = vsyncpa [#allocation3], 0  ;;  %s1139_s0 = inlined_call_operand.hbm [shape: f32[8,128], index: 0, kind: input, shape index: {}]   ;;  %s1140_s1 = inlined_call_operand.hbm [shape: f32[128,128], index: 1, kind: input, shape index: {}]   ;;  %s1141_s2 = inlined_call_operand.vmem [shape: f32[1,128], index: 2, kind: input, shape index: {}]   ;;  %s1142_s3 = inlined_call_operand.hbm [shape: f32[128,128], index: 3, kind: input, shape index: {}]   ;;  %s1143_s4 = inlined_call_operand.vmem [shape: f32[1,128], index: 4, kind: input, shape index: {}]   ;;  %s1144_s5 = inlined_call_operand.hbm [shape: f32[128,128], index: 5, kind: input, shape index: {}]   ;;  %s1145_s6 = inlined_call_operand.vmem [shape: f32[1,128], index: 6, kind: input, shape index: {}]   ;;  %s1146_s7 = inlined_call_operand.hbm [shape: f32[8,128], index: 7, kind: output, shape index: {}]  }
   0x1   :  { %13 = vsyncpa [#allocation6], 0 }
   0x2   :  { %14 = vsyncpa [#allocation9], 0 }
   0x3   :  { %15 = vsyncpa [#allocation4], 0  ;;  %s902_s24 = smov [#allocation5]  }
   0x4   :  { %s31_s25 = sshll.u32 %s902_s24, 4  ;;  %s32_s25 = int_to_ptr.vmem [resolvable:$true] %s31_s25 }
   0x5   :  { %s802_s26 = scalar_lea.vmem %s32_s25, 2048  ;;  %p807_p1 = scmp.lt.s32.totalorder %s32_s25, %s32_s25 }
   0x6   :  { %p803_p0 = scmp.ne.s32.totalorder %s32_s25, %s802_s26  ;;  %p808_p2 = scmp.lt.s32.totalorder %s802_s26, %s802_s26 }
   0x8   :  { %p809_p3 = por %p808_p2, %p807_p1 }
   0xa   :  { %p810_p4 = pnand %p809_p3, %p803_p0 }
   0xc   :  { %813 = shalt.err (!%p810_p4)
}
   0xd   :  { %s903_s27 = smov 128   ;;  %s904_s28 = smov 8  }
   0xe   :  { %37 = dma.hbm_to_vmem [thread:$0]  %s1140_s1, 2048, %s32_s25, [#allocation6], %s903_s27, %s903_s27, %s904_s28  }
   0xf   :  { %s905_s8 = smov [#allocation2]   ;;  %s906_s10 = smov [#allocation7]  }
  0x10   :  { %s22_s9 = sshll.u32 %s905_s8, 4  ;;  %s45_s11 = sshll.u32 %s906_s10, 4  ;;  %s23_s9 = int_to_ptr.vmem [resolvable:$true] %s22_s9  ;;  %s46_s11 = int_to_ptr.vmem [resolvable:$true] %s45_s11 }
  0x11   :  { %s822_s12 = scalar_lea.vmem %s23_s9, 128  ;;  %p827_p6 = scmp.lt.s32.totalorder %s23_s9, %s23_s9 }
  0x12   :  { %p823_p5 = scmp.ne.s32.totalorder %s23_s9, %s822_s12  ;;  %p828_p7 = scmp.lt.s32.totalorder %s822_s12, %s822_s12 }
  0x14   :  { %p829_p8 = por %p828_p7, %p827_p6 }
  0x16   :  { %p830_p9 = pnand %p829_p8, %p823_p5 }
  0x18   :  { %833 = shalt.err (!%p830_p9)
}
  0x19   :  { %25 = dma.hbm_to_vmem [thread:$0]  %s1139_s0, 128, %s23_s9, [#allocation3]  }
  0x1a   :  { %s842_s15 = scalar_lea.vmem %s46_s11, 2048  ;;  %p847_p11 = scmp.lt.s32.totalorder %s46_s11, %s46_s11 }
  0x1b   :  { %p843_p10 = scmp.ne.s32.totalorder %s46_s11, %s842_s15  ;;  %p848_p12 = scmp.lt.s32.totalorder %s842_s15, %s842_s15 }
  0x1d   :  { %p849_p13 = por %p848_p12, %p847_p11 }
  0x1f   :  { %p850_p0 = pnand %p849_p13, %p843_p10 }
  0x21   :  { %853 = shalt.err (!%p850_p0)
}
  0x22   :  { %51 = dma.hbm_to_vmem [thread:$0]  %s1142_s3, 2048, %s46_s11, [#allocation6], %s903_s27, %s903_s27, %s904_s28  }
  0x23   :  { %s907_s17 = smov [#allocation8]  }
  0x24   :  { %s59_s18 = sshll.u32 %s907_s17, 4  ;;  %s60_s18 = int_to_ptr.vmem [resolvable:$true] %s59_s18 }
  0x25   :  { %s862_s19 = scalar_lea.vmem %s60_s18, 2048  ;;  %p867_p2 = scmp.lt.s32.totalorder %s60_s18, %s60_s18 }
  0x26   :  { %p863_p1 = scmp.ne.s32.totalorder %s60_s18, %s862_s19  ;;  %p868_p3 = scmp.lt.s32.totalorder %s862_s19, %s862_s19 }
  0x28   :  { %p869_p4 = por %p868_p3, %p867_p2 }
  0x2a   :  { %p870_p5 = pnand %p869_p4, %p863_p1 }
  0x2c   :  { %873 = shalt.err (!%p870_p5)
}
  0x2d   :  { %65 = dma.hbm_to_vmem [thread:$0]  %s1144_s5, 2048, %s60_s18, [#allocation9], %s903_s27, %s903_s27, %s904_s28  }
  0x2e   :  { %894 = dma.done.wait [#allocation3], 128  }
  0x2f   :  { %895 = vsyncadd [#allocation3], 4294967168 }
  0x30   :  { %896 = dma.done.wait [#allocation6], 4096  }
  0x31   :  { %897 = vsyncadd [#allocation6], 4294963200 }
  0x32   :  { %898 = dma.done.wait [#allocation9], 2048  }
  0x33   :  { %899 = vsyncadd [#allocation9], 4294965248  ;;  %v908_v0 = vmov 0.0   ;;  %vm909_vm0 = vmmov 0   ;;  %v96_v1 = vld [vmem:[#allocation5 + $0x78] sm:$0xff]  ;;  %v95_v2 = vld [vmem:[#allocation5 + $0x70] sm:$0xff] }
  0x34   :  { %610 = vmatprep.subr.mxu0 %v908_v0  ;;  %642 = vmatprep.mubr.msk.f32.mxu0 %vm909_vm0, %v908_v0  ;;  %v94_v3 = vld [vmem:[#allocation5 + $0x68] sm:$0xff]  ;;  %v93_v4 = vld [vmem:[#allocation5 + $0x60] sm:$0xff]  ;;  %v980_v5 = vld [vmem:[#allocation7 + $0x78] sm:$0xff]  ;;  %s910_s23 = smov [#allocation10]  }
  0x35   :  { %645 = vmatprep.subr.mxu1 %v908_v0  ;;  %677 = vmatprep.mubr.msk.f32.mxu1 %vm909_vm0, %v908_v0  ;;  %v92_v6 = vld [vmem:[#allocation5 + $0x58] sm:$0xff]  ;;  %v984_v7 = vld [vmem:[#allocation7 + $0x70] sm:$0xff]  ;;  %v987_v8 = vld [vmem:[#allocation7 + $0x68] sm:$0xff]  ;;  %s511_s24 = sshll.u32 %s910_s23, 4  ;;  %s512_s24 = int_to_ptr.vmem [resolvable:$true] %s511_s24 }
  0x36   :  { %611 = vmatpush3.msra.mxu0 %v96_v1  ;;  %646 = vmatpush3.msra.mxu1 %v980_v5  ;;  %v91_v9 = vld [vmem:[#allocation5 + $0x50] sm:$0xff]  ;;  %v992_v10 = vld [vmem:[#allocation7 + $0x60] sm:$0xff]  ;;  %v90_v11 = vld [vmem:[#allocation5 + $0x48] sm:$0xff]  ;;  %s874_s25 = scalar_lea.vmem %s512_s24, 128  ;;  %p879_p7 = scmp.lt.s32.totalorder %s512_s24, %s512_s24 }
  0x37   :  { %612 = vmatprep.subr.mxu0 %v908_v0  ;;  %647 = vmatprep.subr.mxu1 %v908_v0  ;;  %v997_v12 = vld [vmem:[#allocation7 + $0x58] sm:$0xff]  ;;  %v89_v13 = vld [vmem:[#allocation5 + $0x40] sm:$0xff]  ;;  %v1002_v14 = vld [vmem:[#allocation7 + $0x50] sm:$0xff]  ;;  %p875_p6 = scmp.ne.s32.totalorder %s512_s24, %s874_s25  ;;  %p880_p8 = scmp.lt.s32.totalorder %s874_s25, %s874_s25 }
  0x38   :  { %613 = vmatpush3.msra.mxu0 %v95_v2  ;;  %648 = vmatpush3.msra.mxu1 %v984_v7  ;;  %v88_v15 = vld [vmem:[#allocation5 + $0x38] sm:$0xff]  ;;  %v1007_v16 = vld [vmem:[#allocation7 + $0x48] sm:$0xff]  ;;  %v87_v17 = vld [vmem:[#allocation5 + $0x30] sm:$0xff] }
  0x39   :  { %614 = vmatprep.subr.mxu0 %v908_v0  ;;  %649 = vmatprep.subr.mxu1 %v908_v0  ;;  %v1012_v18 = vld [vmem:[#allocation7 + $0x40] sm:$0xff]  ;;  %v86_v19 = vld [vmem:[#allocation5 + $0x28] sm:$0xff]  ;;  %v1017_v20 = vld [vmem:[#allocation7 + $0x38] sm:$0xff]  ;;  %p881_p9 = por %p880_p8, %p879_p7 }
  0x3a   :  { %615 = vmatpush3.msra.mxu0 %v94_v3  ;;  %650 = vmatpush3.msra.mxu1 %v987_v8  ;;  %v85_v21 = vld [vmem:[#allocation5 + $0x20] sm:$0xff]  ;;  %v1022_v22 = vld [vmem:[#allocation7 + $0x30] sm:$0xff]  ;;  %v84_v23 = vld [vmem:[#allocation5 + $0x18] sm:$0xff] }
  0x3b   :  { %616 = vmatprep.subr.mxu0 %v908_v0  ;;  %651 = vmatprep.subr.mxu1 %v908_v0  ;;  %v1027_v24 = vld [vmem:[#allocation7 + $0x28] sm:$0xff]  ;;  %v83_v25 = vld [vmem:[#allocation5 + $0x10] sm:$0xff]  ;;  %v1032_v26 = vld [vmem:[#allocation7 + $0x20] sm:$0xff]  ;;  %p882_p10 = pnand %p881_p9, %p875_p6 }
  0x3c   :  { %617 = vmatpush3.msra.mxu0 %v93_v4  ;;  %652 = vmatpush3.msra.mxu1 %v992_v10  ;;  %v82_v27 = vld [vmem:[#allocation5 + $0x8] sm:$0xff]  ;;  %v1037_v28 = vld [vmem:[#allocation7 + $0x18] sm:$0xff]  ;;  %v81_v29 = vld [vmem:[#allocation5] sm:$0xff] }
  0x3d   :  { %618 = vmatprep.subr.mxu0 %v908_v0  ;;  %653 = vmatprep.subr.mxu1 %v908_v0  ;;  %v80_v30 = vld [vmem:[#allocation2] sm:$0xff]  ;;  %v177_v31 = vld [vmem:[#allocation7 + $0x10] sm:$0xff]  ;;  %v176_v32 = vld [vmem:[#allocation7 + $0x8] sm:$0xff] }
  0x3e   :  { %619 = vmatpush3.msra.mxu0 %v92_v6  ;;  %654 = vmatpush3.msra.mxu1 %v997_v12  ;;  %v175_v33 = vld [vmem:[#allocation7] sm:$0xff]  ;;  %v522_v34 = vld [vmem:[%s1141_s2] ss:$0 sm:$0xff]  ;;  %v425_v45 = vld [vmem:[#allocation8 + $0x70] sm:$0xff] }
  0x3f   :  { %620 = vmatprep.subr.mxu0 %v908_v0  ;;  %655 = vmatprep.subr.mxu1 %v908_v0  ;;  %v523_v39 = vld [vmem:[%s1143_s4] ss:$0 sm:$0xff]  ;;  %v424_v46 = vld [vmem:[#allocation8 + $0x68] sm:$0xff]  ;;  %v423_v47 = vld [vmem:[#allocation8 + $0x60] sm:$0xff] }
  0x40   :  { %621 = vmatpush3.msra.mxu0 %v91_v9  ;;  %656 = vmatpush3.msra.mxu1 %v1002_v14  ;;  %v426_v44 = vld [vmem:[#allocation8 + $0x78] sm:$0xff]  ;;  %v421_v49 = vld [vmem:[#allocation8 + $0x50] sm:$0xff]  ;;  %v420_v50 = vld [vmem:[#allocation8 + $0x48] sm:$0xff] }
  0x41   :  { %622 = vmatprep.subr.mxu0 %v908_v0  ;;  %657 = vmatprep.subr.mxu1 %v908_v0  ;;  %v422_v48 = vld [vmem:[#allocation8 + $0x58] sm:$0xff]  ;;  %v419_v51 = vld [vmem:[#allocation8 + $0x40] sm:$0xff]  ;;  %v417_v53 = vld [vmem:[#allocation8 + $0x30] sm:$0xff] }
  0x42   :  { %623 = vmatpush3.msra.mxu0 %v90_v11  ;;  %658 = vmatpush3.msra.mxu1 %v1007_v16  ;;  %v418_v52 = vld [vmem:[#allocation8 + $0x38] sm:$0xff]  ;;  %v416_v54 = vld [vmem:[#allocation8 + $0x28] sm:$0xff]  ;;  %v415_v55 = vld [vmem:[#allocation8 + $0x20] sm:$0xff] }
  0x43   :  { %624 = vmatprep.subr.mxu0 %v908_v0  ;;  %659 = vmatprep.subr.mxu1 %v908_v0  ;;  %v414_v56 = vld [vmem:[#allocation8 + $0x18] sm:$0xff]  ;;  %v413_v61 = vld [vmem:[#allocation8 + $0x10] sm:$0xff]  ;;  %v412_v62 = vld [vmem:[#allocation8 + $0x8] sm:$0xff] }
  0x44   :  { %625 = vmatpush3.msra.mxu0 %v89_v13  ;;  %660 = vmatpush3.msra.mxu1 %v1012_v18  ;;  %v411_v63 = vld [vmem:[#allocation8] sm:$0xff] }
  0x45   :  { %626 = vmatprep.subr.mxu0 %v908_v0  ;;  %661 = vmatprep.subr.mxu1 %v908_v0 }
  0x46   :  { %627 = vmatpush3.msra.mxu0 %v88_v15  ;;  %662 = vmatpush3.msra.mxu1 %v1017_v20 }
  0x47   :  { %628 = vmatprep.subr.mxu0 %v908_v0  ;;  %663 = vmatprep.subr.mxu1 %v908_v0 }
  0x48   :  { %629 = vmatpush3.msra.mxu0 %v87_v17  ;;  %664 = vmatpush3.msra.mxu1 %v1022_v22 }
  0x49   :  { %630 = vmatprep.subr.mxu0 %v908_v0  ;;  %665 = vmatprep.subr.mxu1 %v908_v0 }
  0x4a   :  { %631 = vmatpush3.msra.mxu0 %v86_v19  ;;  %666 = vmatpush3.msra.mxu1 %v1027_v24 }
  0x4b   :  { %632 = vmatprep.subr.mxu0 %v908_v0  ;;  %667 = vmatprep.subr.mxu1 %v908_v0 }
  0x4c   :  { %633 = vmatpush3.msra.mxu0 %v85_v21  ;;  %668 = vmatpush3.msra.mxu1 %v1032_v26 }
  0x4d   :  { %634 = vmatprep.subr.mxu0 %v908_v0  ;;  %669 = vmatprep.subr.mxu1 %v908_v0 }
  0x4e   :  { %635 = vmatpush3.msra.mxu0 %v84_v23  ;;  %670 = vmatpush3.msra.mxu1 %v1037_v28 }
  0x4f   :  { %636 = vmatprep.subr.mxu0 %v908_v0  ;;  %671 = vmatprep.subr.mxu1 %v908_v0 }
  0x50   :  { %637 = vmatpush3.msra.mxu0 %v83_v25  ;;  %672 = vmatpush3.msra.mxu1 %v177_v31 }
  0x51   :  { %638 = vmatprep.subr.mxu0 %v908_v0  ;;  %673 = vmatprep.subr.mxu1 %v908_v0 }
  0x52   :  { %639 = vmatpush3.msra.mxu0 %v82_v27  ;;  %674 = vmatpush3.msra.mxu1 %v176_v32 }
  0x53   :  { %640 = vmatprep.subr.mxu0 %v908_v0  ;;  %675 = vmatprep.subr.mxu1 %v908_v0 }
  0x54   :  { %641 = vmatpush3.msra.mxu0 %v81_v29  ;;  %676 = vmatpush3.msra.mxu1 %v175_v33 }
  0x55   :  { %643 = vmatmul.mubr.f32.vlgmr.msra.gmra.mxu0 %v80_v30  ;;  %680 = vmatprep.subr.mxu0 %v908_v0 }
  0x56   :  { %681 = vmatpush3.msra.mxu0 %v980_v5  ;;  %712 = vmatprep.mubr.msk.f32.mxu0 %vm909_vm0, %v908_v0 }
  0x57   :  { %682 = vmatprep.subr.mxu0 %v908_v0  ;;  %715 = vmatprep.subr.mxu1 %v908_v0 }
  0x58   :  { %683 = vmatpush3.msra.mxu0 %v984_v7 }
  0x59   :  { %684 = vmatprep.subr.mxu0 %v908_v0 }
  0x5a   :  { %685 = vmatpush3.msra.mxu0 %v987_v8 }
  0x5b   :  { %686 = vmatprep.subr.mxu0 %v908_v0 }
  0x5c   :  { %687 = vmatpush3.msra.mxu0 %v992_v10 }
  0x5d   :  { %688 = vmatprep.subr.mxu0 %v908_v0 }
  0x5e   :  { %689 = vmatpush3.msra.mxu0 %v997_v12 }
  0x5f   :  { %690 = vmatprep.subr.mxu0 %v908_v0 }
  0x60   :  { %691 = vmatpush3.msra.mxu0 %v1002_v14 }
  0x61   :  { %692 = vmatprep.subr.mxu0 %v908_v0 }
  0x62   :  { %693 = vmatpush3.msra.mxu0 %v1007_v16 }
  0x63   :  { %694 = vmatprep.subr.mxu0 %v908_v0 }
  0x64   :  { %695 = vmatpush3.msra.mxu0 %v1012_v18 }
  0x65   :  { %696 = vmatprep.subr.mxu0 %v908_v0 }
  0x66   :  { %697 = vmatpush3.msra.mxu0 %v1017_v20 }
  0x67   :  { %698 = vmatprep.subr.mxu0 %v908_v0 }
  0x68   :  { %699 = vmatpush3.msra.mxu0 %v1022_v22 }
  0x69   :  { %700 = vmatprep.subr.mxu0 %v908_v0 }
  0x6a   :  { %701 = vmatpush3.msra.mxu0 %v1027_v24 }
  0x6b   :  { %702 = vmatprep.subr.mxu0 %v908_v0 }
  0x6c   :  { %703 = vmatpush3.msra.mxu0 %v1032_v26 }
  0x6d   :  { %704 = vmatprep.subr.mxu0 %v908_v0 }
  0x6e   :  { %705 = vmatpush3.msra.mxu0 %v1037_v28 }
  0x6f   :  { %706 = vmatprep.subr.mxu0 %v908_v0 }
  0x70   :  { %707 = vmatpush3.msra.mxu0 %v177_v31 }
  0x71   :  { %708 = vmatprep.subr.mxu0 %v908_v0 }
  0x72   :  { %709 = vmatpush3.msra.mxu0 %v176_v32 }
  0x73   :  { %710 = vmatprep.subr.mxu0 %v908_v0 }
  0x74   :  { %711 = vmatpush3.msra.mxu0 %v175_v33 }
  0x75   :  { %750 = vmatprep.subr.mxu0 %v908_v0 }
 0x115   :  { %v170_v35 = vpop.f32.mrf.mxu0 }
 0x116   :  { %v171_v36 = vadd.f32 %v522_v34, %v170_v35 }
 0x117   :  { %v644_v37 = vpop.f32.mrf.mxu0 }
 0x118   :  { %v174_v38 = vmax.f32 %v171_v36, 0.0 }
 0x11a   :  { %678 = vmatmul.mubr.f32.vlgmr.msra.gmra.mxu1 %v174_v38 }
 0x11b   :  { %716 = vmatpush3.msra.mxu1 %v980_v5  ;;  %747 = vmatprep.mubr.msk.f32.mxu1 %vm909_vm0, %v908_v0  ;;  %v524_v5 = vld [vmem:[%s1145_s6] ss:$0 sm:$0xff] }
 0x11c   :  { %717 = vmatprep.subr.mxu1 %v908_v0 }
 0x11d   :  { %718 = vmatpush3.msra.mxu1 %v984_v7 }
 0x11e   :  { %719 = vmatprep.subr.mxu1 %v908_v0 }
 0x11f   :  { %720 = vmatpush3.msra.mxu1 %v987_v8 }
 0x120   :  { %721 = vmatprep.subr.mxu1 %v908_v0 }
 0x121   :  { %722 = vmatpush3.msra.mxu1 %v992_v10 }
 0x122   :  { %723 = vmatprep.subr.mxu1 %v908_v0 }
 0x123   :  { %724 = vmatpush3.msra.mxu1 %v997_v12 }
 0x124   :  { %725 = vmatprep.subr.mxu1 %v908_v0 }
 0x125   :  { %726 = vmatpush3.msra.mxu1 %v1002_v14 }
 0x126   :  { %727 = vmatprep.subr.mxu1 %v908_v0 }
 0x127   :  { %728 = vmatpush3.msra.mxu1 %v1007_v16 }
 0x128   :  { %729 = vmatprep.subr.mxu1 %v908_v0 }
 0x129   :  { %730 = vmatpush3.msra.mxu1 %v1012_v18 }
 0x12a   :  { %731 = vmatprep.subr.mxu1 %v908_v0 }
 0x12b   :  { %732 = vmatpush3.msra.mxu1 %v1017_v20 }
 0x12c   :  { %733 = vmatprep.subr.mxu1 %v908_v0 }
 0x12d   :  { %734 = vmatpush3.msra.mxu1 %v1022_v22 }
 0x12e   :  { %735 = vmatprep.subr.mxu1 %v908_v0 }
 0x12f   :  { %736 = vmatpush3.msra.mxu1 %v1027_v24 }
 0x130   :  { %737 = vmatprep.subr.mxu1 %v908_v0 }
 0x131   :  { %738 = vmatpush3.msra.mxu1 %v1032_v26 }
 0x132   :  { %739 = vmatprep.subr.mxu1 %v908_v0 }
 0x133   :  { %740 = vmatpush3.msra.mxu1 %v1037_v28 }
 0x134   :  { %741 = vmatprep.subr.mxu1 %v908_v0 }
 0x135   :  { %742 = vmatpush3.msra.mxu1 %v177_v31 }
 0x136   :  { %743 = vmatprep.subr.mxu1 %v908_v0 }
 0x137   :  { %744 = vmatpush3.msra.mxu1 %v176_v32 }
 0x138   :  { %745 = vmatprep.subr.mxu1 %v908_v0 }
 0x139   :  { %746 = vmatpush3.msra.mxu1 %v175_v33 }
 0x1da   :  { %v264_v40 = vpop.f32.mrf.mxu1 }
 0x1db   :  { %v265_v41 = vadd.f32 %v523_v39, %v264_v40 }
 0x1dc   :  { %v679_v42 = vpop.f32.mrf.mxu1 }
 0x1dd   :  { %v268_v43 = vmax.f32 %v265_v41, 0.0 }
 0x1df   :  { %713 = vmatmul.mubr.f32.vlgmr.msra.gmra.mxu0 %v268_v43 }
 0x1e0   :  { %782 = vmatprep.mubr.msk.f32.mxu0 %vm909_vm0, %v908_v0  ;;  %751 = vmatpush3.msra.mxu0 %v426_v44 }
 0x1e1   :  { %752 = vmatprep.subr.mxu0 %v908_v0 }
 0x1e2   :  { %753 = vmatpush3.msra.mxu0 %v425_v45 }
 0x1e3   :  { %754 = vmatprep.subr.mxu0 %v908_v0 }
 0x1e4   :  { %755 = vmatpush3.msra.mxu0 %v424_v46 }
 0x1e5   :  { %756 = vmatprep.subr.mxu0 %v908_v0 }
 0x1e6   :  { %757 = vmatpush3.msra.mxu0 %v423_v47 }
 0x1e7   :  { %758 = vmatprep.subr.mxu0 %v908_v0 }
 0x1e8   :  { %759 = vmatpush3.msra.mxu0 %v422_v48 }
 0x1e9   :  { %760 = vmatprep.subr.mxu0 %v908_v0 }
 0x1ea   :  { %761 = vmatpush3.msra.mxu0 %v421_v49 }
 0x1eb   :  { %762 = vmatprep.subr.mxu0 %v908_v0 }
 0x1ec   :  { %763 = vmatpush3.msra.mxu0 %v420_v50 }
 0x1ed   :  { %764 = vmatprep.subr.mxu0 %v908_v0 }
 0x1ee   :  { %765 = vmatpush3.msra.mxu0 %v419_v51 }
 0x1ef   :  { %766 = vmatprep.subr.mxu0 %v908_v0 }
 0x1f0   :  { %767 = vmatpush3.msra.mxu0 %v418_v52 }
 0x1f1   :  { %768 = vmatprep.subr.mxu0 %v908_v0 }
 0x1f2   :  { %769 = vmatpush3.msra.mxu0 %v417_v53 }
 0x1f3   :  { %770 = vmatprep.subr.mxu0 %v908_v0 }
 0x1f4   :  { %771 = vmatpush3.msra.mxu0 %v416_v54 }
 0x1f5   :  { %772 = vmatprep.subr.mxu0 %v908_v0 }
 0x1f6   :  { %773 = vmatpush3.msra.mxu0 %v415_v55 }
 0x1f7   :  { %774 = vmatprep.subr.mxu0 %v908_v0 }
 0x1f8   :  { %775 = vmatpush3.msra.mxu0 %v414_v56 }
 0x1f9   :  { %776 = vmatprep.subr.mxu0 %v908_v0 }
 0x1fa   :  { %777 = vmatpush3.msra.mxu0 %v413_v61 }
 0x1fb   :  { %778 = vmatprep.subr.mxu0 %v908_v0 }
 0x1fc   :  { %779 = vmatpush3.msra.mxu0 %v412_v62 }
 0x1fd   :  { %780 = vmatprep.subr.mxu0 %v908_v0 }
 0x1fe   :  { %781 = vmatpush3.msra.mxu0 %v411_v63 }
 0x29f   :  { %v335_v57 = vpop.f32.mrf.mxu0 }
 0x2a0   :  { %v336_v58 = vadd.f32 %v523_v39, %v335_v57 }
 0x2a1   :  { %v714_v59 = vpop.f32.mrf.mxu0 }
 0x2a2   :  { %v339_v60 = vmax.f32 %v336_v58, 0.0 }
 0x2a4   :  { %748 = vmatmul.mubr.f32.vlgmr.msra.gmra.mxu1 %v339_v60 }
 0x364   :  { %v406_v1 = vpop.f32.mrf.mxu1 }
 0x365   :  { %v407_v2 = vadd.f32 %v523_v39, %v406_v1 }
 0x366   :  { %v749_v3 = vpop.f32.mrf.mxu1 }
 0x367   :  { %v410_v4 = vmax.f32 %v407_v2, 0.0 }
 0x369   :  { %783 = vmatmul.mubr.f32.vlgmr.msra.gmra.mxu0 %v410_v4 }
 0x429   :  { %v500_v6 = vpop.f32.mrf.mxu0 }
 0x42a   :  { %v501_v7 = vadd.f32 %v524_v5, %v500_v6 }
 0x42b   :  { %v784_v8 = vpop.f32.mrf.mxu0 }
 0x42c   :  { %504 = vst [vmem:[#allocation10] sm:$0xff] %v501_v7 }
 0x42d   :  { %885 = shalt.err (!%p882_p10)
}
 0x42e   :  { %514 = dma.vmem_to_hbm [thread:$0]  %s512_s24, 128, %s1146_s7, [#allocation4]  }
 0x42f   :  { %900 = dma.done.wait [#allocation4], 128  }
 0x430   :  { %901 = vsyncadd [#allocation4], 4294967168 }
 0x431   :  { %518 = vsyncpa [#allocation3], 1 }
 0x432   :  { %519 = vsyncpa [#allocation6], 1 }
 0x433   :  { %520 = vsyncpa [#allocation9], 1 }
 0x434   :  { %521 = vsyncpa [#allocation4], 1 }

</bundles_post_ra>
